<compile_context>
chip_gen: v6e
topology: v6e:2x2x1
jax: 0.10.0
libtpu: 0.0.40
codegen_flags: <defaults>
</compile_context>

<pallas_src>
import functools
import math

import jax
import jax.numpy as jnp
from jax.experimental import pallas as pl
from jax.experimental.pallas import tpu as pltpu

# Streaming-path chunk cap: 4096*128 elems ~= 2 MiB f32 per plane per grid step
# (cls + 2 loc planes, double buffered ~= 12 MiB), comfortably inside the explicit
# 48 MiB vmem limit on every generation (v7x physical VMEM is 64 MiB).
_MAX_CHUNK_ELEMS = 4096 * 128
_VMEM_LIMIT_BYTES = 48 * 1024 * 1024


def _round_up(x, m):
    return ((x + m - 1) // m) * m


def _smooth_l1_kernel(c0_ref, cr_ref, cls_ref, loc_ref, sum_ref, cnt_ref,
                      *, H, W, R, logit_thr, ROWS, NC, windowed, check_rows):
    b = pl.program_id(0)   # batch          ("parallel")
    j = pl.program_id(1)   # row-chunk step ("parallel" -- no cross-step carry)

    if windowed:
        c0 = c0_ref[b]
        chunk = jnp.minimum(c0 + j, NC - 1)
        # When the (2R+1)-row window already fits inside the last chunk, step j==1
        # would revisit the same chunk -> zero its contribution (no double count).
        live = jnp.where(jnp.logical_and(j == 1, c0 + 1 >= NC), 0.0, 1.0)
    else:
        chunk = j
        live = 1.0

    # Per-batch normalized center (SMEM scalars).
    cr0 = cr_ref[2 * b]
    cr1 = cr_ref[2 * b + 1]
    cyf = cr0 * (H - 1)
    cxf = cr1 * (W - 1)
    cy = jnp.round(cyf)
    cx = jnp.round(cxf)

    # Pixel coordinates of this (ROWS, W) row-chunk: pure iota index math.
    row_base = (chunk * ROWS).astype(jnp.float32)
    row = row_base + jax.lax.broadcasted_iota(jnp.int32, (ROWS, W), 0).astype(jnp.float32)
    col = jax.lax.broadcasted_iota(jnp.int32, (ROWS, W), 1).astype(jnp.float32)

    # TODO(synk): create_labels / create_labels_2 are defined outside this module;
    # `target == 1` is reproduced as a Chebyshev ball of radius center_R around the
    # rounded center pixel (the standard label construction for this loss).
    mask = jnp.maximum(jnp.abs(row - cy), jnp.abs(col - cx)) <= jnp.float32(R)

    # sigmoid(cls) > score_thr  ==  cls > logit(score_thr); native-dtype compare.
    cls = cls_ref[0, 0]
    mask = jnp.logical_and(mask, cls > jnp.asarray(logit_thr, dtype=cls.dtype))

    if check_rows:
        # Ragged boundary row-chunk: kill garbage rows past the image edge.
        mask = jnp.logical_and(mask, row < jnp.float32(H))

    # create_loc_bias: bias = center_rate * (dim - 1) - pixel;  d = loc - bias.
    d0 = loc_ref[0, 0].astype(jnp.float32) - (cyf - row)
    d1 = loc_ref[0, 1].astype(jnp.float32) - (cxf - col)

    def sl1(d):  # Smooth-L1 with beta = 1 (PyTorch default)
        ad = jnp.abs(d)
        return jnp.where(ad < 1.0, 0.5 * d * d, ad - 0.5)

    psum = jnp.sum(jnp.where(mask, sl1(d0) + sl1(d1), 0.0), keepdims=True)
    pcnt = jnp.sum(jnp.where(mask, 1.0, 0.0), keepdims=True)

    sum_ref[0, 0] = psum * live
    cnt_ref[0, 0] = pcnt * live


def smooth_l1_loss(cls_input, loc_input, center_rate,
                   *, center_R=2, weight_rate=1.0, score_thr=0.5):
    B, C, H, W = cls_input.shape
    assert C == 1, "cls_input is a single-channel score map"
    assert loc_input.shape == (B, 2, H, W)
    assert H == W, "kernel assumes square spatial map (as the PyTorch flattening implies)"

    R = int(center_R)

    # --- choose row-chunking -------------------------------------------------
    # Windowed path: the mask can only be nonzero inside (2R+1) image rows around
    # the center, so for large maps only 2 aligned 8-row chunks per batch are DMA'd
    # (chunk index comes from a prefetched per-batch scalar).
    ROWS_W = _round_up(2 * R + 1, 8)
    windowed = H >= 4 * ROWS_W
    if windowed:
        ROWS = ROWS_W
        NC = -(-H // ROWS)
        NJ = 2
    else:
        # Streaming path over row-chunks (whole map), chunk as big as VMEM allows.
        max_rows = max(8, (_MAX_CHUNK_ELEMS // max(W, 1)) // 8 * 8)
        if H <= 8:
            ROWS = H                                  # block == full dim
        elif H % 8 == 0:
            ROWS = min(H, max_rows)
        else:
            ROWS = min((H // 8) * 8, max_rows)        # multiple of 8, <= H
        NC = -(-H // ROWS)
        NJ = NC
    check_rows = (H % ROWS) != 0                      # last chunk is a boundary block

    # --- tiny scalar side inputs (no big-tensor copies in the wrapper) --------
    cr_flat = center_rate.astype(jnp.float32).reshape(-1)        # (2B,) -> SMEM

    if windowed:
        cy_i = jnp.round(center_rate[:, 0].astype(jnp.float32) * (H - 1)).astype(jnp.int32)
        row0 = jnp.clip(cy_i - R, 0, H - 1)
        c0 = jnp.clip(row0 // ROWS, 0, NC - 1).astype(jnp.int32)
    else:
        c0 = jnp.zeros((B,), jnp.int32)

    t = min(max(float(score_thr), 1e-6), 1.0 - 1e-6)
    logit_thr = math.log(t / (1.0 - t))

    kernel = functools.partial(
        _smooth_l1_kernel, H=H, W=W, R=R, logit_thr=logit_thr,
        ROWS=ROWS, NC=NC, windowed=windowed, check_rows=check_rows)

    if windowed:
        def _chunk(b, j, c0_ref):
            return jnp.minimum(c0_ref[b] + j, NC - 1)
    else:
        def _chunk(b, j, c0_ref):
            return j

    grid_spec = pltpu.PrefetchScalarGridSpec(
        num_scalar_prefetch=1,
        grid=(B, NJ),
        in_specs=[
            pl.BlockSpec(memory_space=pltpu.MemorySpace.SMEM),          # center_rate (2B,)
            pl.BlockSpec((1, 1, ROWS, W), lambda b, j, c0: (b, 0, _chunk(b, j, c0), 0)),
            pl.BlockSpec((1, 2, ROWS, W), lambda b, j, c0: (b, 0, _chunk(b, j, c0), 0)),
        ],
        out_specs=[
            pl.BlockSpec((1, 1, 1, 1), lambda b, j, c0: (b, j, 0, 0)),  # partial sums
            pl.BlockSpec((1, 1, 1, 1), lambda b, j, c0: (b, j, 0, 0)),  # partial counts
        ],
    )

    out_sum, out_cnt = pl.pallas_call(
        kernel,
        out_shape=(jax.ShapeDtypeStruct((B, NJ, 1, 1), jnp.float32),
                   jax.ShapeDtypeStruct((B, NJ, 1, 1), jnp.float32)),
        grid_spec=grid_spec,
        compiler_params=pltpu.CompilerParams(
            dimension_semantics=("parallel", "parallel"),
            vmem_limit_bytes=_VMEM_LIMIT_BYTES),
    )(c0, cr_flat, cls_input, loc_input)

    total = jnp.sum(out_sum)
    count = jnp.sum(out_cnt)
    # reduction='mean' over (num_selected, 2) elements; 0 if nothing selected
    loss = jnp.where(count > 0.0, total / (2.0 * count), jnp.float32(0.0))
    return loss * weight_rate


def _reference(cls_input, loc_input, center_rate, *, center_R, weight_rate, score_thr):
    """Pure-JAX reference with identical masked-mean semantics."""
    _, _, H, W = cls_input.shape
    t = min(max(float(score_thr), 1e-6), 1.0 - 1e-6)
    logit_thr = math.log(t / (1.0 - t))
    cls = cls_input[:, 0].astype(jnp.float32)
    loc = loc_input.astype(jnp.float32)
    cr0 = center_rate[:, 0].astype(jnp.float32)[:, None, None]
    cr1 = center_rate[:, 1].astype(jnp.float32)[:, None, None]
    row = jnp.arange(H, dtype=jnp.float32)[None, :, None]
    col = jnp.arange(W, dtype=jnp.float32)[None, None, :]
    bias0 = cr0 * (H - 1) - row
    bias1 = cr1 * (W - 1) - col
    d0 = loc[:, 0] - bias0
    d1 = loc[:, 1] - bias1

    def sl1(d):
        ad = jnp.abs(d)
        return jnp.where(ad < 1.0, 0.5 * d * d, ad - 0.5)

    cy = jnp.round(cr0 * (H - 1))
    cx = jnp.round(cr1 * (W - 1))
    reg_mask = jnp.maximum(jnp.abs(row - cy), jnp.abs(col - cx)) <= float(center_R)
    cls_mask = cls > logit_thr        # == sigmoid(cls) > score_thr
    mask = reg_mask & cls_mask
    tot = jnp.sum(jnp.where(mask, sl1(d0) + sl1(d1), 0.0))
    cnt = jnp.sum(mask.astype(jnp.float32))
    return jnp.where(cnt > 0.0, tot / (2.0 * cnt), 0.0) * weight_rate


if __name__ == "__main__":
    key = jax.random.PRNGKey(0)

    def run_case(B, H, W):
        k1, k2, k3 = jax.random.split(jax.random.fold_in(key, H * W + B), 3)
        cls_input = jax.random.normal(k1, (B, 1, H, W), dtype=jnp.float32)
        loc_input = jax.random.normal(k2, (B, 2, H, W), dtype=jnp.float32)
        center_rate = jax.random.uniform(k3, (B, 2), dtype=jnp.float32,
                                         minval=0.2, maxval=0.8)
        loss = smooth_l1_loss(cls_input, loc_input, center_rate,
                              center_R=2, weight_rate=1.0, score_thr=0.5)
        ref = _reference(cls_input, loc_input, center_rate,
                         center_R=2, weight_rate=1.0, score_thr=0.5)
        loss, ref = jax.block_until_ready((loss, ref))
        assert jnp.allclose(loss, ref, rtol=1e-5, atol=1e-5), (H, W, float(loss), float(ref))
        return loss

    run_case(2, 16, 16)     # small map: single-step streaming path (grid = (B, 1))
    run_case(2, 20, 20)     # streaming path with a ragged boundary row-chunk
    run_case(2, 128, 128)   # large map: scalar-prefetch windowed path (2 chunks / batch)
    print("KERNEL_OK")
</pallas_src>

<mosaic_0001>
module attributes {stable_mosaic.version = 11 : i64} {
  func.func @_smooth_l1_kernel(%arg0: i32, %arg1: i32, %arg2: memref<2xi32, #tpu.memory_space<smem>>, %arg3: memref<4xf32, #tpu.memory_space<smem>>, %arg4: memref<1x1x16x16xf32, #tpu.memory_space<vmem>>, %arg5: memref<1x2x16x16xf32, #tpu.memory_space<vmem>>, %arg6: memref<1x1x1x1xf32, #tpu.memory_space<vmem>>, %arg7: memref<1x1x1x1xf32, #tpu.memory_space<vmem>>) attributes {dimension_semantics = [#tpu.dimension_semantics<parallel>, #tpu.dimension_semantics<parallel>], iteration_bounds = array<i64: 2, 1>, scalar_prefetch = 1 : i64, scratch_operands = 0 : i64, tpu.core_type = #tpu.core_type<tc>, window_params = [{transform_indices = @transform_0, window_bounds = array<i64: 4>}, {transform_indices = @transform_1, window_bounds = array<i64: 1, 1, 16, 16>}, {transform_indices = @transform_2, window_bounds = array<i64: 1, 2, 16, 16>}, {transform_indices = @transform_3, window_bounds = array<i64: 1, 1, 1, 1>}, {transform_indices = @transform_4, window_bounds = array<i64: 1, 1, 1, 1>}]} {
    %c2_i32 = arith.constant 2 : i32
    %0 = arith.muli %c2_i32, %arg0 : i32
    %1 = arith.index_cast %0 : i32 to index
    %2 = memref.load %arg3[%1] : memref<4xf32, #tpu.memory_space<smem>>
    %c2_i32_0 = arith.constant 2 : i32
    %3 = arith.muli %c2_i32_0, %arg0 : i32
    %c1_i32 = arith.constant 1 : i32
    %4 = arith.addi %3, %c1_i32 : i32
    %5 = arith.index_cast %4 : i32 to index
    %6 = memref.load %arg3[%5] : memref<4xf32, #tpu.memory_space<smem>>
    %cst = arith.constant 1.500000e+01 : f32
    %7 = arith.mulf %2, %cst : f32
    %cst_1 = arith.constant 1.500000e+01 : f32
    %8 = arith.mulf %6, %cst_1 : f32
    %9 = math.roundeven %7 : f32
    %10 = math.roundeven %8 : f32
    %c16_i32 = arith.constant 16 : i32
    %11 = arith.muli %arg1, %c16_i32 : i32
    %12 = arith.sitofp %11 : i32 to f32
    %13 = tpu.iota {dimensions = array<i32: 0>} : vector<16x16xi32>
    %14 = arith.sitofp %13 : vector<16x16xi32> to vector<16x16xf32>
    %15 = vector.broadcast %12 : f32 to vector<16x16xf32>
    %16 = arith.addf %15, %14 : vector<16x16xf32>
    %17 = tpu.iota {dimensions = array<i32: 1>} : vector<16x16xi32>
    %18 = arith.sitofp %17 : vector<16x16xi32> to vector<16x16xf32>
    %19 = vector.broadcast %9 : f32 to vector<16x16xf32>
    %20 = arith.subf %16, %19 : vector<16x16xf32>
    %21 = math.absf %20 : vector<16x16xf32>
    %22 = vector.broadcast %10 : f32 to vector<16x16xf32>
    %23 = arith.subf %18, %22 : vector<16x16xf32>
    %24 = math.absf %23 : vector<16x16xf32>
    %25 = arith.maximumf %21, %24 : vector<16x16xf32>
    %cst_2 = arith.constant 2.000000e+00 : f32
    %26 = vector.broadcast %cst_2 : f32 to vector<16x16xf32>
    %27 = arith.cmpf ole, %25, %26 : vector<16x16xf32>
    %c0 = arith.constant 0 : index
    %c0_3 = arith.constant 0 : index
    %c0_4 = arith.constant 0 : index
    %c0_5 = arith.constant 0 : index
    %28 = vector.load %arg4[%c0, %c0_3, %c0_4, %c0_5] : memref<1x1x16x16xf32, #tpu.memory_space<vmem>>, vector<1x1x16x16xf32>
    %29 = vector.shape_cast %28 : vector<1x1x16x16xf32> to vector<16x16xf32>
    %cst_6 = arith.constant 0.000000e+00 : f32
    %30 = vector.broadcast %cst_6 : f32 to vector<16x16xf32>
    %31 = arith.cmpf ogt, %29, %30 : vector<16x16xf32>
    %32 = arith.andi %27, %31 : vector<16x16xi1>
    %c0_7 = arith.constant 0 : index
    %c0_8 = arith.constant 0 : index
    %c0_9 = arith.constant 0 : index
    %c0_10 = arith.constant 0 : index
    %33 = vector.load %arg5[%c0_7, %c0_8, %c0_9, %c0_10] : memref<1x2x16x16xf32, #tpu.memory_space<vmem>>, vector<1x1x16x16xf32>
    %34 = vector.shape_cast %33 : vector<1x1x16x16xf32> to vector<16x16xf32>
    %35 = vector.broadcast %7 : f32 to vector<16x16xf32>
    %36 = arith.subf %35, %16 : vector<16x16xf32>
    %37 = arith.subf %34, %36 : vector<16x16xf32>
    %c0_11 = arith.constant 0 : index
    %c1 = arith.constant 1 : index
    %c0_12 = arith.constant 0 : index
    %c0_13 = arith.constant 0 : index
    %38 = vector.load %arg5[%c0_11, %c1, %c0_12, %c0_13] : memref<1x2x16x16xf32, #tpu.memory_space<vmem>>, vector<1x1x16x16xf32>
    %39 = vector.shape_cast %38 : vector<1x1x16x16xf32> to vector<16x16xf32>
    %40 = vector.broadcast %8 : f32 to vector<16x16xf32>
    %41 = arith.subf %40, %18 : vector<16x16xf32>
    %42 = arith.subf %39, %41 : vector<16x16xf32>
    %43 = math.absf %37 : vector<16x16xf32>
    %cst_14 = arith.constant 1.000000e+00 : f32
    %44 = vector.broadcast %cst_14 : f32 to vector<16x16xf32>
    %45 = arith.cmpf olt, %43, %44 : vector<16x16xf32>
    %cst_15 = arith.constant 5.000000e-01 : f32
    %46 = vector.broadcast %cst_15 : f32 to vector<16x16xf32>
    %47 = arith.mulf %46, %37 : vector<16x16xf32>
    %48 = arith.mulf %47, %37 : vector<16x16xf32>
    %cst_16 = arith.constant 5.000000e-01 : f32
    %49 = vector.broadcast %cst_16 : f32 to vector<16x16xf32>
    %50 = arith.subf %43, %49 : vector<16x16xf32>
    %51 = arith.select %45, %48, %50 : vector<16x16xi1>, vector<16x16xf32>
    %52 = math.absf %42 : vector<16x16xf32>
    %cst_17 = arith.constant 1.000000e+00 : f32
    %53 = vector.broadcast %cst_17 : f32 to vector<16x16xf32>
    %54 = arith.cmpf olt, %52, %53 : vector<16x16xf32>
    %cst_18 = arith.constant 5.000000e-01 : f32
    %55 = vector.broadcast %cst_18 : f32 to vector<16x16xf32>
    %56 = arith.mulf %55, %42 : vector<16x16xf32>
    %57 = arith.mulf %56, %42 : vector<16x16xf32>
    %cst_19 = arith.constant 5.000000e-01 : f32
    %58 = vector.broadcast %cst_19 : f32 to vector<16x16xf32>
    %59 = arith.subf %52, %58 : vector<16x16xf32>
    %60 = arith.select %54, %57, %59 : vector<16x16xi1>, vector<16x16xf32>
    %61 = arith.addf %51, %60 : vector<16x16xf32>
    %cst_20 = arith.constant 0.000000e+00 : f32
    %62 = vector.broadcast %cst_20 : f32 to vector<16x16xf32>
    %63 = arith.select %32, %61, %62 : vector<16x16xi1>, vector<16x16xf32>
    %64 = vector.shape_cast %63 : vector<16x16xf32> to vector<1x16x16xf32>
    %cst_21 = arith.constant dense<0.000000e+00> : vector<1xf32>
    %65 = vector.multi_reduction <add>, %64, %cst_21 [1, 2] : vector<1x16x16xf32> to vector<1xf32>
    %66 = vector.shape_cast %65 : vector<1xf32> to vector<1x1x1xf32>
    %67 = vector.extract %66[0, 0, 0] : f32 from vector<1x1x1xf32>
    %68 = vector.broadcast %67 : f32 to vector<1x1xf32>
    %cst_22 = arith.constant 1.000000e+00 : f32
    %cst_23 = arith.constant 0.000000e+00 : f32
    %69 = vector.broadcast %cst_22 : f32 to vector<16x16xf32>
    %70 = vector.broadcast %cst_23 : f32 to vector<16x16xf32>
    %71 = arith.select %32, %69, %70 : vector<16x16xi1>, vector<16x16xf32>
    %72 = vector.shape_cast %71 : vector<16x16xf32> to vector<1x16x16xf32>
    %cst_24 = arith.constant dense<0.000000e+00> : vector<1xf32>
    %73 = vector.multi_reduction <add>, %72, %cst_24 [1, 2] : vector<1x16x16xf32> to vector<1xf32>
    %74 = vector.shape_cast %73 : vector<1xf32> to vector<1x1x1xf32>
    %75 = vector.extract %74[0, 0, 0] : f32 from vector<1x1x1xf32>
    %76 = vector.broadcast %75 : f32 to vector<1x1xf32>
    %cst_25 = arith.constant 1.000000e+00 : f32
    %77 = vector.broadcast %cst_25 : f32 to vector<1x1xf32>
    %78 = arith.mulf %68, %77 : vector<1x1xf32>
    %c0_26 = arith.constant 0 : index
    %c0_27 = arith.constant 0 : index
    %c0_28 = arith.constant 0 : index
    %c0_29 = arith.constant 0 : index
    %79 = vector.load %arg6[%c0_26, %c0_27, %c0_28, %c0_29] : memref<1x1x1x1xf32, #tpu.memory_space<vmem>>, vector<1x1x1x1xf32>
    %80 = vector.shape_cast %79 : vector<1x1x1x1xf32> to vector<1x1xf32>
    %81 = vector.shape_cast %78 : vector<1x1xf32> to vector<1x1x1x1xf32>
    tpu.vector_store %arg6[%c0_26, %c0_27, %c0_28, %c0_29], %81 {strides = array<i32>} : memref<1x1x1x1xf32, #tpu.memory_space<vmem>>, vector<1x1x1x1xf32>,
    %cst_30 = arith.constant 1.000000e+00 : f32
    %82 = vector.broadcast %cst_30 : f32 to vector<1x1xf32>
    %83 = arith.mulf %76, %82 : vector<1x1xf32>
    %c0_31 = arith.constant 0 : index
    %c0_32 = arith.constant 0 : index
    %c0_33 = arith.constant 0 : index
    %c0_34 = arith.constant 0 : index
    %84 = vector.load %arg7[%c0_31, %c0_32, %c0_33, %c0_34] : memref<1x1x1x1xf32, #tpu.memory_space<vmem>>, vector<1x1x1x1xf32>
    %85 = vector.shape_cast %84 : vector<1x1x1x1xf32> to vector<1x1xf32>
    %86 = vector.shape_cast %83 : vector<1x1xf32> to vector<1x1x1x1xf32>
    tpu.vector_store %arg7[%c0_31, %c0_32, %c0_33, %c0_34], %86 {strides = array<i32>} : memref<1x1x1x1xf32, #tpu.memory_space<vmem>>, vector<1x1x1x1xf32>,
    return
  }
  func.func @transform_0(%arg0: i32, %arg1: i32, %arg2: memref<2xi32, #tpu.memory_space<smem>>) -> i32 {
    %c0_i32 = arith.constant 0 : i32
    %c0_i32_0 = arith.constant 0 : i32
    return %c0_i32 : i32
  }
  func.func @transform_1(%arg0: i32, %arg1: i32, %arg2: memref<2xi32, #tpu.memory_space<smem>>) -> (i32, i32, i32, i32) {
    %c0_i32 = arith.constant 0 : i32
    %c0_i32_0 = arith.constant 0 : i32
    %c0_i32_1 = arith.constant 0 : i32
    return %arg0, %c0_i32, %arg1, %c0_i32_0 : i32, i32, i32, i32
  }
  func.func @transform_2(%arg0: i32, %arg1: i32, %arg2: memref<2xi32, #tpu.memory_space<smem>>) -> (i32, i32, i32, i32) {
    %c0_i32 = arith.constant 0 : i32
    %c0_i32_0 = arith.constant 0 : i32
    %c0_i32_1 = arith.constant 0 : i32
    return %arg0, %c0_i32, %arg1, %c0_i32_0 : i32, i32, i32, i32
  }
  func.func @transform_3(%arg0: i32, %arg1: i32, %arg2: memref<2xi32, #tpu.memory_space<smem>>) -> (i32, i32, i32, i32) {
    %c0_i32 = arith.constant 0 : i32
    %c0_i32_0 = arith.constant 0 : i32
    %c0_i32_1 = arith.constant 0 : i32
    return %arg0, %arg1, %c0_i32, %c0_i32_0 : i32, i32, i32, i32
  }
  func.func @transform_4(%arg0: i32, %arg1: i32, %arg2: memref<2xi32, #tpu.memory_space<smem>>) -> (i32, i32, i32, i32) {
    %c0_i32 = arith.constant 0 : i32
    %c0_i32_0 = arith.constant 0 : i32
    %c0_i32_1 = arith.constant 0 : i32
    return %arg0, %arg1, %c0_i32, %c0_i32_0 : i32, i32, i32, i32
  }
}

</mosaic_0001>

<bundles_post_ra>
// kernel: tpu_custom_call.1
= control target key start
LH: loop header
LB: loop body
LE: loop exit
PB: predicated region body
PF: predicated region fallthrough
CT: control target
= control target key end

     0   :  { %s846_s18 = smov [#allocation3]   ;;  %s1087_s0 = inlined_call_operand.hbm [shape: s32[2], index: 0, kind: input, shape index: {}]   ;;  %s1088_s1 = inlined_call_operand.vmem [shape: f32[4], index: 1, kind: input, shape index: {}]   ;;  %s1089_s2 = inlined_call_operand.hbm [shape: f32[2,1,16,16], index: 2, kind: input, shape index: {}]   ;;  %s1090_s3 = inlined_call_operand.hbm [shape: f32[2,2,16,16], index: 3, kind: input, shape index: {}]   ;;  %s1091_s4 = inlined_call_operand.vmem [shape: f32[2,1,1,1], index: 4, kind: output, shape index: {0}]   ;;  %s1092_s5 = inlined_call_operand.vmem [shape: f32[2,1,1,1], index: 5, kind: output, shape index: {1}]  }
   0x1   :  { %1095 = sst [smem:[#allocation14_spill]] %s1088_s1 }
   0x2   :  { %1096 = sst [smem:[#allocation15_spill]] %s1089_s2 }
   0x3   :  { %12 = dma.hbm_to_smem %s1087_s0, 16, %s846_s18, [#allocation2] }
   0x4   :  { %808 = dma.done.wait [#allocation2], 16 }
   0x5   :  { %809 = vsyncadd [#allocation2], 4294967280 }
   0x6   :  { %14 = sfence }
   0x7   :  { %15 = vsyncpa [#allocation6], 0 }
   0x8   :  { %16 = vsyncpa [#allocation5], 0 }
   0x9   :  { %18 = vsyncpa [#allocation5 + $0x1], 0 }
   0xa   :  { %19 = vsyncpa [#allocation9], 0 }
   0xb   :  { %21 = vsyncpa [#allocation9 + $0x1], 0  ;;  %s886_s21 = smov 0   ;;  %s888_s22 = smov 0  }
   0xc   :  { %s890_s23 = smov 0   ;;  %s892_s24 = smov 0  }
   0xd   :  { %s894_s25 = smov 0   ;;  %s896_s26 = smov 0  }
   0xe LB: > { %s600_s0 = sadd.s32 4294967295, %s844_s26   ;;  %s69_s27 = sadd.s32 1, %s832_s23  ;;  %s844_s26 = sphi %s896_s26, %s27_s26   ;;  %s840_s25 = sphi %s894_s25, %s1120_s25   ;;  %s836_s24 = sphi %s892_s24, %s1119_s24   ;;  %s832_s23 = sphi %s890_s23, %s1118_s23   ;;  %s828_s22 = sphi %s888_s22, %s1117_s22   ;;  %s824_s21 = sphi %s886_s21, %s1116_s21  }
   0xf   : > { %p76_p0 = scmp.ne.s32.totalorder %s832_s23, %s828_s22  ;;  %p77_p1 = scmp.eq.s32.totalorder %s844_s26, 0 }
  0x10   : > { %p82_p2 = scmp.ne.s32.totalorder %s828_s22, %s824_s21  ;;  %p920_p3 = scmp.eq.s32.totalorder %s600_s0, 0 }
  0x11   : > { %p78_p4 = por %p77_p1, %p76_p0  ;;  %p602_p5 = scmp.ge.s32.totalorder %s844_s26, 1 }
  0x12   : > { %p927_p6 = por %p920_p3, %p82_p2  ;;  %p177_p7 = scmp.lt.s32.totalorder %s844_s26, 3 }
  0x13   : > { %s1099_s1 = sld [smem:[#allocation14_spill]]  ;;  %p650_p10 = scmp.lt.s32.totalorder %s844_s26, 2 }
  0x14   : > { %s1098_s29 = scalar_select %p927_p6, 1, 0 }
  0x15   : > { %p935_p8 = pnand %p602_p5, %p177_p7  ;;  %s943_s9 = sand.u32 1, %s832_s23  }
  0x16   : > { %p947_p12 = pnand %p650_p10, %p78_p4 }
  0x17   : > { %s1100_s8 = scalar_select %p935_p8, 1, 0 }
  0x18   : > { %p638_p9 = pneg %p935_p8 }
  0x19   : > { %s190_s7 = sshll.u32 %s1099_s1, 4  ;;  %s191_s7 = int_to_ptr.vmem [resolvable:$true] %s190_s7 }
  0x1a   : > { %p639_p11 = pnand %p638_p9, %p920_p3  ;;  %s713_s11 = scalar_lea.vmem %s191_s7, 16 }
  0x1b   : > { %p714_p13 = scmp.ne.s32.totalorder %s191_s7, %s713_s11  ;;  %p721_p5 = scmp.lt.s32.totalorder %s191_s7, %s191_s7 }
  0x1c   : > { %p715_p0 = pneg %p639_p11  ;;  %p722_p7 = scmp.lt.s32.totalorder %s713_s11, %s713_s11 }
  0x1e   : > { %p716_p1 = pnand %p715_p0, %p714_p13  ;;  %p723_p6 = por %p722_p7, %p721_p5 }
  0x20   : > { %p717_p2 = pneg %p716_p1 }
  0x22   : > { %p724_p8 = pnand %p723_p6, %p717_p2 }
  0x24   : > { %727 = shalt.err (!%p724_p8)
}
  0x25   : > { %s847_s12 = smov [#allocation4]   ;;  %s39_s13 = sadd.s32 1, %s840_s25 }
  0x26   : > { %641 = dma.vmem_to_smem (!%p639_p11), %s191_s7, 16, %s847_s12, [#allocation6]  }
  0x27   : > { %s605_s14 = sshll.u32 %s943_s9, 4  ;;  %p41_p4 = scmp.ge.s32.totalorder %s39_s13, 2 }
  0x28   : > { %s624_s15 = sshll.u32 %s840_s25, 8  ;;  %s205_s16 = scalar_lea.vmem [#allocation7], %s605_s14 }
  0x29   : > { %s214_s17 = sshll.u32 %s205_s16, 4  ;;  %s1122_s13 = smov (%p41_p4, %s39_s13), 0  ;;  %s215_s17 = int_to_ptr.vmem [resolvable:$true] %s214_s17 }
  0x2a   : > { %s1102_s2 = sld [smem:[#allocation15_spill]]  ;;  %s64_s21 = ssub.s32 %s840_s25, %s1122_s13 }
  0x2b   : > { %p961_p6 = scmp.eq.s32.totalorder %s64_s21, 0  ;;  %s202_s30 = scalar_lea.sflag [#allocation5], %s943_s9 }
  0x2c   : > { %p730_p8 = pneg %p947_p12  ;;  %s741_s6 = scalar_lea.vmem %s215_s17, 256 }
  0x2d   : > { %p742_p9 = scmp.ne.s32.totalorder %s215_s17, %s741_s6  ;;  %s848_s7 = smov [#allocation7]  }
  0x2e   : > { %s746_s11 = sshll.u32 %s848_s7, 4  ;;  %s747_s11 = int_to_ptr.vmem [resolvable:$false] %s746_s11 }
  0x2f   : > { %p744_p10 = pnand %p742_p9, %p730_p8  ;;  %s748_s12 = scalar_lea.vmem %s747_s11, 512 }
  0x30   : > { %s213_s20 = scalar_lea.hbm %s1102_s2, %s624_s15  ;;  %p749_p13 = scmp.lt.s32.totalorder %s215_s17, %s747_s11 }
  0x31   : > { %p745_p11 = pneg %p744_p10  ;;  %p750_p0 = scmp.lt.s32.totalorder %s748_s12, %s741_s6 }
  0x33   : > { %p751_p1 = por %p750_p0, %p749_p13 }
  0x35   : > { %p752_p2 = pnand %p751_p1, %p745_p11 }
  0x37   : > { %755 = shalt.err (!%p752_p2)
}
  0x38   : > { %s849_s14 = smov 128   ;;  %s850_s15 = smov 8  }
  0x39   : > { %645 = dma.hbm_to_vmem [thread:$0]  (!%p947_p12), %s213_s20, 256, %s215_s17, %s202_s30, %s849_s14, %s849_s14, %s850_s15  }
  0x3a   : > { %s978_s16 = scalar_select %p961_p6, %s832_s23, %s69_s27  }
  0x3b   : > { %s608_s18 = sshll.u32 %s943_s9, 5  ;;  %s625_s19 = sshll.u32 %s840_s25, 9 }
  0x3c   : > { %s236_s7 = scalar_lea.hbm %s1090_s3, %s625_s19  ;;  %s228_s11 = scalar_lea.vmem [#allocation8], %s608_s18 }
  0x3d   : > { %s237_s12 = sshll.u32 %s228_s11, 4  ;;  %s225_s1 = scalar_lea.sflag [#allocation9], %s943_s9  ;;  %s238_s12 = int_to_ptr.vmem [resolvable:$true] %s237_s12 }
  0x3e   : > { %s769_s2 = scalar_lea.vmem %s238_s12, 512  ;;  %s851_s17 = smov [#allocation8]  }
  0x3f   : > { %p770_p5 = scmp.ne.s32.totalorder %s238_s12, %s769_s2  ;;  %s774_s20 = sshll.u32 %s851_s17, 4  ;;  %s775_s20 = int_to_ptr.vmem [resolvable:$false] %s774_s20 }
  0x40   : > { %s776_s27 = scalar_lea.vmem %s775_s20, 1024  ;;  %p777_p6 = scmp.lt.s32.totalorder %s238_s12, %s775_s20 }
  0x41   : > { %p772_p7 = pnand %p770_p5, %p730_p8  ;;  %p778_p9 = scmp.lt.s32.totalorder %s776_s27, %s769_s2 }
  0x43   : > { %p773_p4 = pneg %p772_p7  ;;  %p779_p10 = por %p778_p9, %p777_p6 }
  0x45   : > { %p780_p11 = pnand %p779_p10, %p773_p4 }
  0x47   : > { %783 = shalt.err (!%p780_p11)
}
  0x48   : > { %648 = dma.hbm_to_vmem [thread:$0]  (!%p947_p12), %s236_s7, 512, %s238_s12, %s225_s1, %s849_s14, %s849_s14, %s850_s15  }
  0x49   : > { %p1104_p13 = scmp.ne.s32.totalorder %s1100_s8, 0 }
  0x4b   : > { %249 = sbr.rel (%p1104_p13) target bundleno = 329 (0x149), region = 32 }
  0x50   : > { %811 = dma.done.wait (%p920_p3), [#allocation6], 16  }
  0x51   : > { %813 = vsyncadd (%p920_p3), [#allocation6], 4294967280  ;;  %s255_s9 = sand.u32 1, %s828_s22   ;;  %p1105_p8 = scmp.ne.s32.totalorder %s1098_s29, 0 }
  0x52   : > { %s613_s0 = sshll.u32 %s255_s9, 4  ;;  %s256_s2 = scalar_lea.sflag [#allocation5], %s255_s9 }
  0x53   : > { %s998_s30 = scalar_lea.vmem [#allocation7], %s613_s0 }
  0x54   : > { %815 = dma.done.wait (%p1105_p8), %s256_s2, 256  }
  0x55   : > { %817 = vsyncadd (%p1105_p8), %s256_s2, 4294967040  ;;  %s614_s1 = sshll.u32 %s255_s9, 5  ;;  %s265_s8 = scalar_lea.sflag [#allocation9], %s255_s9 }
  0x56   : > { %s268_s10 = scalar_lea.vmem [#allocation8], %s614_s1 }
  0x57   : > { %819 = dma.done.wait (%p1105_p8), %s265_s8, 512  }
  0x58   : > { %821 = vsyncadd (%p1105_p8), %s265_s8, 4294966784 }
  0x59   : > { %273 = sfence }
  0x5a   : > { %s615_s28 = sshll.u32 %s836_s24, 1  ;;  %v344_v0 = vlaneseq  ;;  %v373_v7 = vld [vmem:[%s268_s10] sm:$0xff]  ;;  %v374_v8 = vld [vmem:[%s268_s10 + $0x8] sm:$0xff]  ;;  %v616_v12 = vld [vmem:[%s268_s10 + $0x10] sm:$0xff]  ;;  %vm415_vm8 = vcmask 130048   ;;  %v852_v59 = vmov 0.0  }
  0x5b   : > { %s321_s14 = sld [smem:[#allocation4 + %s615_s28]]  ;;  %s322_s15 = sadd.s32 1, %s615_s28  ;;  %v617_v13 = vld [vmem:[%s268_s10 + $0x18] sm:$0xff]  ;;  %v367_v47 = vld [vmem:[%s998_s30] sm:$0xff]  ;;  %vm443_vm11 = vcmask 0  }
  0x5c   : > { %s323_s18 = sld [smem:[#allocation4 + %s322_s15]]  ;;  %v345_v1 = vshrl.u32 %v344_v0, 7  ;;  %v353_v2 = vand.u32 127, %v344_v0  ;;  %v368_v51 = vld [vmem:[%s998_s30 + $0x8] sm:$0xff]  ;;  %vm369_vm4 = vcmp.gt.f32.partialorder %v367_v47, 0.0  ;;  %p308_p0 = scmp.lt.s32.totalorder %s836_s24, 1 }
  0x5d   : > { %vm370_vm5 = vcmp.gt.f32.partialorder %v368_v51, 0.0 }
  0x5e   : > { %v346_v3 = vadd.s32 8, %v345_v1  ;;  %v347_v4 = vcvt.s32.f32 %v345_v1  ;;  %v354_v6 = vcvt.s32.f32 %v353_v2  ;;  %s1128_s24 = smov (!%p308_p0, %s836_s24), 1 }
  0x60   : > { %v348_v5 = vcvt.s32.f32 %v346_v3 }
  0x61   : > { %s1009_s19 = smul.f32 15.0, %s321_s14  ;;  %s313_s14 = scalar_lea.vmem %s1091_s4, %s1128_s24 }
  0x62   : > { %s1011_s29 = smul.f32 15.0, %s323_s18 }
  0x63   : > { %s326_s21 = scvt.f32.s32 %s1009_s19  ;;  %s329_s6 = sand.u32 2147483648, %s1009_s19  ;;  %v375_v9 = vstv %s1009_s19 }
  0x64   : > { %s331_s7 = sand.u32 2147483647, %s1009_s19  ;;  %s334_s11 = scvt.f32.s32 %s1011_s29  ;;  %v376_v10 = vsub.f32 %v375_v9, %v347_v4  ;;  %v377_v11 = vsub.f32 %v375_v9, %v348_v5  ;;  %v383_v14 = vstv %s1011_s29 }
  0x65   : > { %s327_s12 = scvt.s32.f32 %s326_s21  ;;  %p1019_p3 = scmp.lt.f32.partialorder %s331_s7, 2.1474836e+09  ;;  %v384_v15 = vsub.f32 %v383_v14, %v354_v6 }
  0x66   : > { %s335_s20 = scvt.s32.f32 %s334_s11  ;;  %s337_s27 = sand.u32 2147483648, %s1011_s29  ;;  %v378_v16 = vsub.f32 %v373_v7, %v376_v10  ;;  %v379_v17 = vsub.f32 %v374_v8, %v377_v11 }
  0x67   : > { %s328_s9 = sand.u32 2147483647, %s327_s12  ;;  %s339_s0 = sand.u32 2147483647, %s1011_s29  ;;  %v385_v18 = vsub.f32 %v616_v12, %v384_v15  ;;  %v386_v19 = vsub.f32 %v617_v13, %v384_v15 }
  0x68   : > { %s330_s2 = sor.u32 %s329_s6, %s328_s9  ;;  %s336_s1 = sand.u32 2147483647, %s335_s20  ;;  %v387_v20 = vand.u32 2147483647, %v378_v16  ;;  %v388_v21 = vand.u32 2147483647, %v379_v17 }
  0x69   : > { %s1124_s2 = smov (!%p1019_p3, %s330_s2), %s1009_s19  ;;  %v391_v22 = vmul.f32 0.5, %v378_v16  ;;  %v392_v23 = vmul.f32 0.5, %v379_v17  ;;  %v399_v24 = vand.u32 2147483647, %v385_v18  ;;  %s338_s8 = sor.u32 %s337_s27, %s336_s1  ;;  %v400_v26 = vand.u32 2147483647, %v386_v19 }
  0x6a   : > { %p1028_p12 = scmp.lt.f32.partialorder %s339_s0, 2.1474836e+09  ;;  %vm1032_vm0 = vcmp.lt.f32.partialorder %v387_v20, 1.0  ;;  %v355_v27 = vstv %s1124_s2  ;;  %vm1036_vm1 = vcmp.lt.f32.partialorder %v388_v21, 1.0  ;;  %v618_v29 = vadd.f32 -0.5, %v387_v20 }
  0x6b   : > { %v619_v30 = vadd.f32 -0.5, %v388_v21  ;;  %v356_v31 = vsub.f32 %v347_v4, %v355_v27  ;;  %v357_v32 = vsub.f32 %v348_v5, %v355_v27  ;;  %v393_v33 = vmul.f32 %v391_v22, %v378_v16 }
  0x6c   : > { %s1126_s8 = smov (!%p1028_p12, %s338_s8), %s1011_s29  ;;  %v403_v34 = vmul.f32 0.5, %v385_v18  ;;  %v394_v35 = vmul.f32 %v392_v23, %v379_v17  ;;  %vm1043_vm2 = vcmp.lt.f32.partialorder %v399_v24, 1.0  ;;  %v404_v37 = vmul.f32 0.5, %v386_v19  ;;  %s319_s29 = scalar_lea.vmem %s1092_s5, %s1128_s24 }
  0x6d   : > { %v620_v38 = vadd.f32 -0.5, %v399_v24  ;;  %v358_v39 = vand.u32 2147483647, %v356_v31  ;;  %v360_v40 = vstv %s1126_s8  ;;  %vm1047_vm3 = vcmp.lt.f32.partialorder %v400_v26, 1.0 }
  0x6e   : > { %v405_v42 = vmul.f32 %v403_v34, %v385_v18  ;;  %v359_v43 = vand.u32 2147483647, %v357_v32  ;;  %v361_v44 = vsub.f32 %v354_v6, %v360_v40  ;;  %v406_v45 = vmul.f32 %v404_v37, %v386_v19 }
  0x6f   : > { %v621_v46 = vadd.f32 -0.5, %v400_v26  ;;  %v397_v48 = vsel %vm1032_vm0, %v393_v33, %v618_v29  ;;  %v398_v52 = vsel %vm1036_vm1, %v394_v35, %v619_v30 }
  0x70   : > { %v409_v49 = vsel %vm1043_vm2, %v405_v42, %v620_v38  ;;  %v362_v50 = vand.u32 2147483647, %v361_v44 }
  0x71   : > { %v410_v53 = vsel %vm1047_vm3, %v406_v45, %v621_v46  ;;  %v411_v56 = vadd.f32 %v409_v49, %v397_v48 }
  0x72   : > { %v363_v54 = vmax.f32 %v358_v39, %v362_v50  ;;  %v364_v55 = vmax.f32 %v359_v43, %v362_v50  ;;  %v412_v57 = vadd.f32 %v410_v53, %v398_v52 }
  0x74   : > { %vm365_vm6 = vcmp.le.f32.partialorder %v363_v54, 2.0  ;;  %vm366_vm7 = vcmp.le.f32.partialorder %v364_v55, 2.0 }
  0x75   : > { %vm371_vm9 = vmand %vm365_vm6, %vm369_vm4 }
  0x76   : > { %vm372_vm10 = vmand %vm366_vm7, %vm370_vm5  ;;  %v413_v58 = vsel %vm371_vm9, %v411_v56, 0.0  ;;  %v428_v60 = vsel %vm371_vm9, 1.0, %v852_v59 }
  0x77   : > { %v414_v61 = vsel %vm372_vm10, %v412_v57, 0.0  ;;  %v416_v62 = vsel %vm415_vm8, %v413_v58, 0.0  ;;  %v429_v63 = vsel %vm372_vm10, 1.0, %v852_v59  ;;  %v430_v1 = vsel %vm415_vm8, %v428_v60, 0.0 }
  0x78   : > { %v417_v0 = vsel %vm415_vm8, %v414_v61, 0.0  ;;  %v431_v2 = vsel %vm415_vm8, %v429_v63, 0.0 }
  0x79   : > { %v418_v3 = vadd.f32 %v417_v0, %v416_v62  ;;  %v432_v4 = vadd.f32 %v431_v2, %v430_v1 }
  0x7b   : > { %419 = vadd.xlane.f32.xlu0 %v418_v3 }
  0x7f   : > { %433 = vadd.xlane.f32.xlu0 %v432_v4 }
 0x104   : > { %v420_v5 = vpop.xlane.xlu0 %419 }
 0x105   : > { %v421_v6 = vrot.slane %v420_v5, 4 }
 0x107   : > { %v422_v7 = vadd.f32 %v421_v6, %v420_v5 }
 0x108   : > { %v434_v8 = vpop.xlane.xlu0 %433 }
 0x109   : > { %v423_v9 = vrot.slane %v422_v7, 2  ;;  %v435_v10 = vrot.slane %v434_v8, 4 }
 0x10b   : > { %v436_v11 = vadd.f32 %v435_v10, %v434_v8  ;;  %v424_v12 = vadd.f32 %v423_v9, %v422_v7 }
 0x10d   : > { %v437_v13 = vrot.slane %v436_v11, 2  ;;  %v425_v14 = vrot.slane %v424_v12, 1 }
 0x10f   : > { %v438_v15 = vadd.f32 %v437_v13, %v436_v11  ;;  %v426_v16 = vadd.f32 %v425_v14, %v424_v12 }
 0x111   : > { %626 = vpush %v426_v16  ;;  %v439_v17 = vrot.slane %v438_v15, 1 }
 0x113   : > { %v440_v18 = vadd.f32 %v439_v17, %v438_v15 }
 0x115   : > { %628 = vpush %v440_v18 }
 0x142   : > { %s627_s15 = spop %626 }
 0x143   : > { %v442_v19 = vstv %s627_s15 }
 0x144   : > { %444 = vst.msk [vmem:[%s313_s14] sm:$0x1] %vm443_vm11, %v442_v19 }
 0x146   : > { %s629_s21 = spop %628 }
 0x147   : > { %v445_v20 = vstv %s629_s21 }
 0x148   : > { %446 = vst.msk [vmem:[%s319_s29] sm:$0x1] %vm443_vm11, %v445_v20 }
 0x149 PF: > { %s27_s26 = sadd.s32 1, %s844_s26   ;;  %s1116_s21 = smov %s828_s22 }
 0x14a   : > { %p24_p1 = scmp.ge.s32.totalorder %s27_s26, 4   ;;  %s1117_s22 = smov %s832_s23 }
 0x14b   : > { %s1118_s23 = smov %s978_s16  ;;  %s1119_s24 = smov %s840_s25 }
 0x14c   : > { %s1120_s25 = smov %s1122_s13  ;;  %26 = sbr.rel (!%p24_p1) target bundleno = 14 (0xe), region = 103 }
 0x151   :  { %488 = vsyncpa [#allocation5], 1 }
 0x152   :  { %490 = vsyncpa [#allocation5 + $0x1], 1 }
 0x153   :  { %491 = vsyncpa [#allocation9], 1 }
 0x154   :  { %493 = vsyncpa [#allocation9 + $0x1], 1 }
 0x155   :  { %494 = vsyncpa [#allocation6], 1 }
 0x156   :  { %496 = vsyncpa [#allocation6 + $0x1], 1 }

</bundles_post_ra>
